<compile_context>
chip_gen: v5e
topology: v5e:2x2
jax: 0.10.0
libtpu: 0.0.40
codegen_flags: <defaults>
</compile_context>

<pallas_src>
import math
import functools

import jax
import jax.numpy as jnp
from jax.experimental import pallas as pl
from jax.experimental.pallas import tpu as pltpu

SIGMA = math.pi                        # Gaussian envelope width
_VMEM_TILE_BUDGET = 36 * 1024 * 1024   # 2*in + 2*out + 2*bank must fit here


def _gabor_bank(gabor_params, H, W):
    """Tiny (no_g, 1, H*W) float32 Gabor filter bank, computed in plain JAX."""
    no_g = gabor_params.shape[1]
    theta = gabor_params[0].astype(jnp.float32)[:, None, None]
    freq = gabor_params[1].astype(jnp.float32)[:, None, None]
    yy = (jnp.arange(H, dtype=jnp.float32) - (H - 1) / 2.0)[:, None]
    xx = (jnp.arange(W, dtype=jnp.float32) - (W - 1) / 2.0)[None, :]
    xp = xx * jnp.cos(theta) + yy * jnp.sin(theta)
    yp = -xx * jnp.sin(theta) + yy * jnp.cos(theta)
    envelope = jnp.exp(-(xp * xp + yp * yp) / (2.0 * SIGMA * SIGMA))
    carrier = jnp.cos((2.0 * math.pi) * freq * xp)
    return (envelope * carrier).reshape(no_g, 1, H * W)


def _igabor_mul_kernel(filt_ref, x_ref, o_ref):
    # filt_ref: (no_g, 1, THW) -- whole filter bank for the current lane tile,
    #           VMEM-resident across the innermost g loop (index ignores g).
    # x_ref:    (TN, TC, THW)  -- activation tile, fetched once per (n, c, hw).
    # o_ref:    (TN, TC, THW)  -- output tile at block (n, g, c, hw).
    g = pl.program_id(3)
    f = filt_ref[g]                                   # (1, THW) dynamic slice
    o_ref[...] = (x_ref[...] * f).astype(o_ref.dtype)


def _tile_target_bytes():
    """Per-generation activation-tile target (review: v7x 6-8 MiB, v6e ~4 MiB,
    v5e ~2 MiB).  Falls back conservatively if the device kind is unknown."""
    try:
        kind = jax.devices()[0].device_kind.lower()
    except Exception:                     # pragma: no cover
        return 4 * 1024 * 1024
    if "v7" in kind:
        return 6 * 1024 * 1024
    if "v6" in kind:
        return 4 * 1024 * 1024
    return 2 * 1024 * 1024


def _pick_tiles(N, C, HW, itemsize, target):
    """Pick (TN, TC, THW) for the activation tile.

    Legality: THW is HW or a multiple of 128; TC is C or a multiple of the
    dtype's sublane packing; the tile never exceeds `target` bytes.
    """
    sub = 8 * max(1, 4 // itemsize)        # 8 (f32) / 16 (bf16) / 32 (int8)
    lane = 128
    # Lane (last-dim) block: budget at least min(C, sub) rows per tile so the
    # smallest legal channel block can never blow past the target.
    min_rows = min(C, sub)
    per_row_budget = max(lane * itemsize, target // max(1, min_rows))
    if HW * itemsize <= per_row_budget:
        thw = HW
    else:
        thw = max(lane, (per_row_budget // itemsize // lane) * lane)
        if thw >= HW:
            thw = HW
    row_bytes = thw * itemsize
    # Channel (second-minor) block: full C or a multiple of `sub`.
    max_c = max(1, target // row_bytes)
    if C <= max_c or C <= sub:
        tc = C
    else:
        tc = min(C, max(sub, (max_c // sub) * sub))
    # Batch block fills the remaining budget.
    tn = max(1, min(N, target // max(1, tc * row_bytes)))
    return tn, tc, thw


def _choose_tiling(N, C, HW, no_g, itemsize, target):
    """Shrink the target until double-buffered in/out/bank fit the budget."""
    target = max(int(target), 256 * 1024)
    while True:
        tn, tc, thw = _pick_tiles(N, C, HW, itemsize, target)
        tile_bytes = tn * tc * thw * itemsize
        # Each (1, THW) bank slice pads to a full sublane tile: 32 B per lane.
        bank_bytes = no_g * 32 * thw
        need = 4 * tile_bytes + 2 * bank_bytes
        if need <= _VMEM_TILE_BUDGET or target <= 256 * 1024:
            return tn, tc, thw, need
        target //= 2


def _split_for_megacore(N, C, HW, tn, tc, thw, sub):
    """If everything is a single block, split a parallel axis so both
    TensorCores of a megacore part (v7x) get work.  Keeps block legality."""
    if pl.cdiv(N, tn) * pl.cdiv(C, tc) * pl.cdiv(HW, thw) > 1:
        return tn, tc, thw
    if N >= 2:
        return (N + 1) // 2, tc, thw
    if C >= 2 * sub:
        return tn, (C // 2 // sub) * sub, thw
    if HW >= 256 and thw == HW:
        return tn, tc, max(128, ((HW // 2) // 128) * 128)
    return tn, tc, thw


@functools.partial(jax.jit, static_argnames=("layer",))
def igabor_forward(x, gabor_params, layer=False):
    N, C, H, W = x.shape
    no_g = gabor_params.shape[1]
    HW = H * W
    itemsize = jnp.dtype(x.dtype).itemsize
    sub = 8 * max(1, 4 // itemsize)

    x_flat = x.reshape(N, C, HW)                       # lane axis = H*W
    # Bank computed in f32 (transcendentals) once, then cast to the activation
    # dtype so the kernel multiply runs natively (bf16 stays bf16 on v6e/v7x).
    # Assumes a floating-point activation dtype.
    filt_bank = _gabor_bank(gabor_params, H, W).astype(x.dtype)   # (no_g,1,HW)

    target = _tile_target_bytes()
    TN, TC, THW, vmem_need = _choose_tiling(N, C, HW, no_g, itemsize, target)
    TN, TC, THW = _split_for_megacore(N, C, HW, TN, TC, THW, sub)

    # g innermost so every activation tile is read from HBM exactly once and
    # reused for all no_g filters.
    grid = (pl.cdiv(N, TN), pl.cdiv(C, TC), pl.cdiv(HW, THW), no_g)

    vmem_limit = int(min(48 << 20, max(32 << 20, vmem_need + (8 << 20))))

    cost = pl.CostEstimate(
        flops=N * no_g * C * HW,
        transcendentals=0,
        bytes_accessed=N * C * HW * itemsize                         # x once
        + grid[0] * grid[1] * no_g * HW * itemsize                   # bank
        + N * no_g * C * HW * itemsize,                              # output
    )

    out = pl.pallas_call(
        _igabor_mul_kernel,
        out_shape=jax.ShapeDtypeStruct((N, no_g, C, HW), x.dtype),
        grid=grid,
        in_specs=[
            # Whole filter bank for the current lane tile: index is g- and
            # (n, c)-invariant, so it stays VMEM-resident across the innermost
            # loop instead of being re-DMA'd every grid step.
            pl.BlockSpec((no_g, 1, THW), lambda n, c, hw, g: (0, 0, hw)),
            # Activation tile: index ignores g -> DMA'd once, reused for all g.
            # TODO(synk): sweep pipeline_mode=pl.Buffered(3) here on real HW.
            pl.BlockSpec((TN, TC, THW), lambda n, c, hw, g: (n, c, hw)),
        ],
        # Emit the final (N, no_g, C, HW) layout directly (no transpose).
        out_specs=pl.BlockSpec((TN, None, TC, THW),
                               lambda n, c, hw, g: (n, g, c, hw)),
        compiler_params=pltpu.CompilerParams(
            dimension_semantics=("parallel", "parallel", "parallel",
                                 "arbitrary"),
            vmem_limit_bytes=vmem_limit,
        ),
        cost_estimate=cost,
    )(filt_bank, x_flat)

    # Both module views are free reshapes of the contiguous (N, no_g, C, H, W).
    if layer:
        return out.reshape(N, no_g * C, H, W)
    return out.reshape(N * no_g, C, H, W)


def igabor_reference(x, gabor_params, layer=False):
    """Pure-JAX reference with identical semantics."""
    N, C, H, W = x.shape
    no_g = gabor_params.shape[1]
    theta = gabor_params[0][:, None, None]
    freq = gabor_params[1][:, None, None]
    yy = (jnp.arange(H, dtype=jnp.float32) - (H - 1) / 2.0)[:, None]
    xx = (jnp.arange(W, dtype=jnp.float32) - (W - 1) / 2.0)[None, :]
    xp = xx * jnp.cos(theta) + yy * jnp.sin(theta)
    yp = -xx * jnp.sin(theta) + yy * jnp.cos(theta)
    filt = jnp.exp(-(xp ** 2 + yp ** 2) / (2.0 * SIGMA ** 2)) * jnp.cos(
        2.0 * math.pi * freq * xp
    )
    out = filt[None, :, None, :, :] * x[:, None, :, :, :]  # (N, no_g, C, H, W)
    if layer:
        return out.reshape(N, no_g * C, H, W)
    return out.reshape(N * no_g, C, H, W)


if __name__ == "__main__":
    key = jax.random.PRNGKey(0)
    kx, kp = jax.random.split(key)

    no_g = 4
    N, C, H, W = 2, 4, 16, 16
    x = jax.random.normal(kx, (N, C, H, W), dtype=jnp.float32)

    # Deterministic parameter init, same shapes/distribution as the module:
    # params[0] = arange(no_g)/no_g*pi ; params[1] ~ U(-1/sqrt(no_g), 1/sqrt(no_g))
    thetas = jnp.arange(no_g, dtype=jnp.float32) / no_g * math.pi
    bound = 1.0 / math.sqrt(no_g)
    freqs = jax.random.uniform(kp, (no_g,), minval=-bound, maxval=bound,
                               dtype=jnp.float32)
    gabor_params = jnp.stack([thetas, freqs], axis=0)        # (2, no_g)

    # layer=False (module default): (N*no_g, C, H, W)
    out = jax.block_until_ready(igabor_forward(x, gabor_params, layer=False))
    ref = igabor_reference(x, gabor_params, layer=False)
    assert out.shape == (N * no_g, C, H, W), out.shape
    assert jnp.allclose(out, ref, rtol=1e-4, atol=1e-5), float(
        jnp.max(jnp.abs(out - ref)))

    # layer=True path: (N, no_g*C, H, W)
    out_l = jax.block_until_ready(igabor_forward(x, gabor_params, layer=True))
    ref_l = igabor_reference(x, gabor_params, layer=True)
    assert out_l.shape == (N, no_g * C, H, W), out_l.shape
    assert jnp.allclose(out_l, ref_l, rtol=1e-4, atol=1e-5), float(
        jnp.max(jnp.abs(out_l - ref_l)))

    # bf16 path (review: native-dtype compute on v6e/v7x; output keeps x.dtype).
    x_bf = x.astype(jnp.bfloat16)
    out_bf = jax.block_until_ready(
        igabor_forward(x_bf, gabor_params, layer=False))
    assert out_bf.dtype == jnp.bfloat16, out_bf.dtype
    ref_bf = igabor_reference(x_bf, gabor_params, layer=False)
    assert jnp.allclose(out_bf.astype(jnp.float32),
                        ref_bf.astype(jnp.float32),
                        rtol=5e-2, atol=5e-2)

    print("KERNEL_OK")
</pallas_src>

<mosaic_0001>
module attributes {stable_mosaic.version = 11 : i64} {
  func.func @_igabor_mul_kernel(%arg0: i32, %arg1: i32, %arg2: i32, %arg3: i32, %arg4: memref<4x1x256xf32, #tpu.memory_space<vmem>>, %arg5: memref<1x4x256xf32, #tpu.memory_space<vmem>>, %arg6: memref<1x1x4x256xf32, #tpu.memory_space<vmem>>) attributes {dimension_semantics = [#tpu.dimension_semantics<parallel>, #tpu.dimension_semantics<parallel>, #tpu.dimension_semantics<parallel>, #tpu.dimension_semantics<arbitrary>], iteration_bounds = array<i64: 2, 1, 1, 4>, scalar_prefetch = 0 : i64, scratch_operands = 0 : i64, tpu.core_type = #tpu.core_type<tc>, window_params = [{transform_indices = @transform_0, window_bounds = array<i64: 4, 1, 256>}, {transform_indices = @transform_1, window_bounds = array<i64: 1, 4, 256>}, {transform_indices = @transform_2, window_bounds = array<i64: 1, 1, 4, 256>}]} {
    %0 = arith.index_cast %arg3 : i32 to index
    %c0 = arith.constant 0 : index
    %c0_0 = arith.constant 0 : index
    %1 = vector.load %arg4[%0, %c0, %c0_0] : memref<4x1x256xf32, #tpu.memory_space<vmem>>, vector<1x1x256xf32>
    %2 = vector.shape_cast %1 : vector<1x1x256xf32> to vector<1x256xf32>
    %c0_1 = arith.constant 0 : index
    %c0_2 = arith.constant 0 : index
    %c0_3 = arith.constant 0 : index
    %3 = vector.load %arg5[%c0_1, %c0_2, %c0_3] : memref<1x4x256xf32, #tpu.memory_space<vmem>>, vector<1x4x256xf32>
    %4 = vector.shape_cast %2 : vector<1x256xf32> to vector<1x1x256xf32>
    %5 = vector.broadcast %4 : vector<1x1x256xf32> to vector<1x4x256xf32>
    %6 = arith.mulf %3, %5 : vector<1x4x256xf32>
    %c0_4 = arith.constant 0 : index
    %c0_5 = arith.constant 0 : index
    %c0_6 = arith.constant 0 : index
    %c0_7 = arith.constant 0 : index
    %7 = vector.load %arg6[%c0_4, %c0_5, %c0_6, %c0_7] : memref<1x1x4x256xf32, #tpu.memory_space<vmem>>, vector<1x1x4x256xf32>
    %8 = vector.shape_cast %7 : vector<1x1x4x256xf32> to vector<1x4x256xf32>
    %9 = vector.shape_cast %6 : vector<1x4x256xf32> to vector<1x1x4x256xf32>
    tpu.vector_store %arg6[%c0_4, %c0_5, %c0_6, %c0_7], %9 {strides = array<i32>} : memref<1x1x4x256xf32, #tpu.memory_space<vmem>>, vector<1x1x4x256xf32>,
    return
  }
  func.func @transform_0(%arg0: i32, %arg1: i32, %arg2: i32, %arg3: i32) -> (i32, i32, i32) {
    %c0_i32 = arith.constant 0 : i32
    %c0_i32_0 = arith.constant 0 : i32
    %c0_i32_1 = arith.constant 0 : i32
    return %c0_i32, %c0_i32_0, %arg2 : i32, i32, i32
  }
  func.func @transform_1(%arg0: i32, %arg1: i32, %arg2: i32, %arg3: i32) -> (i32, i32, i32) {
    %c0_i32 = arith.constant 0 : i32
    return %arg0, %arg1, %arg2 : i32, i32, i32
  }
  func.func @transform_2(%arg0: i32, %arg1: i32, %arg2: i32, %arg3: i32) -> (i32, i32, i32, i32) {
    %c0_i32 = arith.constant 0 : i32
    return %arg0, %arg3, %arg1, %arg2 : i32, i32, i32, i32
  }
}

</mosaic_0001>

<bundles_post_ra>
// kernel: igabor_forward.1
= control target key start
LH: loop header
LB: loop body
LE: loop exit
PB: predicated region body
PF: predicated region fallthrough
CT: control target
= control target key end

     0   :  { %s521_s9 = smov 0   ;;  %s523_s10 = smov 0   ;;  %s572_s0 = inlined_call_operand.vmem [shape: f32[4,1,256], index: 0, kind: input, shape index: {}]   ;;  %s573_s1 = inlined_call_operand.vmem [shape: f32[2,4,256], index: 1, kind: input, shape index: {}]   ;;  %s574_s2 = inlined_call_operand.vmem [shape: f32[2,4,4,256], index: 2, kind: output, shape index: {}]  }
   0x1   :  { %s525_s11 = smov 0   ;;  %s527_s12 = smov 0  }
   0x2   :  { %s529_s13 = smov 0  }
   0x3 LB: > { %s27_s14 = sadd.s32 1, %s496_s11  ;;  %s38_s15 = sadd.s32 1, %s500_s12  ;;  %s504_s13 = sphi %s529_s13, %s12_s13   ;;  %s500_s12 = sphi %s527_s12, %s578_s12   ;;  %s496_s11 = sphi %s525_s11, %s577_s11   ;;  %s492_s10 = sphi %s523_s10, %s576_s10   ;;  %s488_s9 = sphi %s521_s9, %s575_s9  }
   0x4   : > { %p28_p0 = scmp.ge.s32.totalorder %s27_s14, 4  ;;  %p416_p1 = scmp.ge.s32.totalorder %s504_s13, 1 }
   0x5   : > { %p167_p2 = scmp.lt.s32.totalorder %s504_s13, 9 }
   0x6   : > { %s580_s14 = smov (%p28_p0, %s27_s14), 0  ;;  %s582_s15 = smov (!%p28_p0, %s38_s15), %s500_s12 }
   0x7   : > { %p168_p3 = pnand %p416_p1, %p167_p2  ;;  %p40_p4 = scmp.ge.s32.totalorder %s582_s15, 2 }
   0x8   : > { %p219_p5 = scmp.lt.s32.totalorder (!%p168_p3), %s492_s10, 1  ;;  %p235_p6 = scmp.lt.s32.totalorder (!%p168_p3), %s488_s9, 3 }
   0x9   : > { %s584_s15 = smov (%p40_p4, %s582_s15), 0  ;;  %171 = sbr.rel (%p168_p3) target bundleno = 23 (0x17), region = 28 }
   0xa   : > { %s422_s16 = sshll.u32 (!%p168_p3), %s488_s9, 1 }
   0xb   : > { %s251_s20 = scalar_lea.vmem (!%p168_p3), %s572_s0, %s422_s16 }
   0xe   : > { %s586_s10 = smov (!%p219_p5, %s492_s10), 1  ;;  %s588_s9 = smov (!%p235_p6, %s488_s9), 3  ;;  %v252_v0 = vld [vmem:[%s251_s20] sm:$0x3]  ;;  %vm258_vm0 = vcmask 1043456  }
   0xf   : > { %s425_s17 = sshll.u32 %s586_s10, 3  ;;  %s419_s24 = sshll.u32 %s588_s9, 1  ;;  %v255_v1 = vperm.slane %v252_v0, 0  ;;  %v256_v2 = vperm.slane %v252_v0, 1 }
  0x10   : > { %s230_s23 = scalar_lea.vmem %s573_s1, %s425_s17  ;;  %s246_s25 = sadd.s32 %s425_s17, %s419_s24 }
  0x11   : > { %s421_s26 = sshll.u32 %s246_s25, 2  ;;  %v253_v3 = vld [vmem:[%s230_s23] sm:$0xff]  ;;  %v257_v4 = vrot.slane %v256_v2, 4 }
  0x12   : > { %s248_s29 = scalar_lea.vmem %s574_s2, %s421_s26 }
  0x13   : > { %v259_v5 = vsel %vm258_vm0, %v255_v1, %v257_v4 }
  0x14   : > { %v261_v6 = vmul.f32 %v259_v5, %v253_v3 }
  0x16   : > { %262 = vst [vmem:[%s248_s29] sm:$0xff] %v261_v6 }
  0x17 PF: > { %s12_s13 = sadd.s32 1, %s504_s13   ;;  %s575_s9 = smov %s496_s11 }
  0x18   : > { %p9_p7 = scmp.ge.s32.totalorder %s12_s13, 10   ;;  %s576_s10 = smov %s500_s12 }
  0x19   : > { %s577_s11 = smov %s580_s14  ;;  %s578_s12 = smov %s584_s15 }
  0x1a   :  { %11 = sbr.rel (!%p9_p7) target bundleno = 3 (0x3), region = 62 }

</bundles_post_ra>
